<compile_context>
chip_gen: v7x
topology: tpu7x:2x2x1
jax: 0.10.0
libtpu: 0.0.40
codegen_flags: <defaults>
</compile_context>

<pallas_src>
import functools

import jax
import jax.numpy as jnp
from jax.experimental import pallas as pl
from jax.experimental.pallas import tpu as pltpu

LANES = 128
MAX_TILE_ROWS = 4096  # (4096,128) f32 tile: 2 inputs x 2 bufs ~= 8 MiB VMEM
NUM_SPLITS = 2        # leading parallel axis: 2 TensorCores on v7x


def _bce_sum_kernel(x_ref, y_ref, o_ref, acc_ref, *,
                    rows, tile_rows, blocks_per_split, full_blocks, needs_mask):
    """Accumulate the elementwise BCE sum for one split of the row stream."""
    c = pl.program_id(0)            # split (TensorCore) index
    j = pl.program_id(1)            # step within this split
    nj = pl.num_programs(1)

    @pl.when(j == 0)
    def _():
        acc_ref[...] = jnp.zeros_like(acc_ref)

    x = x_ref[...].astype(jnp.float32)
    y = y_ref[...].astype(jnp.float32)

    # PyTorch BCELoss clamps each log term at -100 for numerical stability.
    log_x = jnp.maximum(jnp.log(x), -100.0)
    log_1mx = jnp.maximum(jnp.log(1.0 - x), -100.0)
    # -(y*log(x) + (1-y)*log(1-x)) == -(log(1-x) + y*(log(x) - log(1-x)))
    loss = -(log_1mx + y * (log_x - log_1mx))

    def _accum(v):
        # Partial-reduce the (tile_rows, 128) tile to (8, 128) with pure vreg
        # adds on the VPU (no XLU), then accumulate into the tiny scratch.
        r8 = (tile_rows // 8) * 8            # static
        if r8:
            acc_ref[...] += v[:r8].reshape(r8 // 8, 8, LANES).sum(axis=0)
        rem_rows = tile_rows - r8            # static, 0..7 (tiny inputs only)
        if rem_rows:
            acc_ref[0:rem_rows, :] += v[r8:, :]

    if needs_mask:
        # Global row-block index of this step.
        g = c * blocks_per_split + j

        @pl.when(g < full_blocks)            # fully valid block: no mask
        def _():
            _accum(loss)

        @pl.when(g >= full_blocks)           # partial or fully out-of-bounds
        def _():
            valid = rows - g * tile_rows     # may be <= 0 (padded step)
            row = jax.lax.broadcasted_iota(jnp.int32, (tile_rows, LANES), 0)
            _accum(jnp.where(row < valid, loss, 0.0))
    else:
        _accum(loss)

    @pl.when(j == nj - 1)
    def _():
        o_ref[...] = jnp.sum(acc_ref[...]).reshape(1, 1, 1)


def _clamped_bce_sum(x, y):
    """Plain-jnp BCE sum (used for the <128-element lane tail)."""
    x = x.astype(jnp.float32)
    y = y.astype(jnp.float32)
    log_x = jnp.maximum(jnp.log(x), -100.0)
    log_1mx = jnp.maximum(jnp.log(1.0 - x), -100.0)
    return jnp.sum(-(log_1mx + y * (log_x - log_1mx)))


@jax.jit
def binary_cross_entropy(probs, labels):
    """Mean BCE over all elements, matching nn.BCELoss() defaults.

    `probs` must already be probabilities in (0, 1) (BCELoss, not WithLogits).
    """
    assert probs.shape == labels.shape
    n_elem = probs.size  # static

    x = probs.reshape(-1)
    y = labels.reshape(-1)

    # Non-lane-aligned tail (< 128 elements): handled with plain jnp, so the
    # kernel path never pads (the common aligned case is a zero-copy reshape).
    rem = n_elem % LANES
    n_main = n_elem - rem
    tail_sum = jnp.float32(0.0)
    if rem:
        tail_sum = _clamped_bce_sum(x[n_main:], y[n_main:])
        # TODO(synk): the prefix slice below still copies in the rare unaligned
        # case; a 1-D BlockSpec over the unpadded array would make it zero-copy.
        x = x[:n_main]
        y = y[:n_main]

    if n_main == 0:
        return (tail_sum / n_elem).astype(jnp.float32)

    rows = n_main // LANES
    x2d = x.reshape(rows, LANES)
    y2d = y.reshape(rows, LANES)

    # Single full-extent block for small inputs; big 8-aligned tiles otherwise.
    tile_rows = min(rows, MAX_TILE_ROWS)
    total_blocks = pl.cdiv(rows, tile_rows)

    # Split across 2 TensorCores (v7x) when worthwhile: always for even block
    # counts, and for odd counts only when the padded extra block is cheap.
    num_splits = NUM_SPLITS if (total_blocks >= 2 and
                                (total_blocks % 2 == 0 or total_blocks >= 8)) else 1
    blocks_per_split = pl.cdiv(total_blocks, num_splits)
    full_blocks = rows // tile_rows
    needs_mask = (num_splits * blocks_per_split) != full_blocks
    last_block = total_blocks - 1

    def in_map(c, j):
        # Clamp padded steps (odd block counts) back in-bounds; their data is
        # fully masked in-kernel.
        return (jnp.minimum(c * blocks_per_split + j, last_block), 0)

    kernel = functools.partial(
        _bce_sum_kernel,
        rows=rows, tile_rows=tile_rows, blocks_per_split=blocks_per_split,
        full_blocks=full_blocks, needs_mask=needs_mask)

    partial_sums = pl.pallas_call(
        kernel,
        out_shape=jax.ShapeDtypeStruct((num_splits, 1, 1), jnp.float32),
        grid_spec=pltpu.PrefetchScalarGridSpec(
            num_scalar_prefetch=0,
            grid=(num_splits, blocks_per_split),
            in_specs=[
                pl.BlockSpec((tile_rows, LANES), in_map),
                pl.BlockSpec((tile_rows, LANES), in_map),
            ],
            out_specs=pl.BlockSpec((1, 1, 1), lambda c, j: (c, 0, 0)),
            scratch_shapes=[pltpu.VMEM((8, LANES), jnp.float32)],
        ),
        compiler_params=pltpu.CompilerParams(
            dimension_semantics=("parallel", "arbitrary"),
        ),
    )(x2d, y2d)

    total = jnp.sum(partial_sums) + tail_sum
    return (total / n_elem).astype(jnp.float32)


def _reference_bce(probs, labels):
    x = probs.astype(jnp.float32)
    y = labels.astype(jnp.float32)
    log_x = jnp.maximum(jnp.log(x), -100.0)
    log_1mx = jnp.maximum(jnp.log(1.0 - x), -100.0)
    return jnp.mean(-(y * log_x + (1.0 - y) * log_1mx))


if __name__ == "__main__":
    key = jax.random.PRNGKey(0)
    k1, k2 = jax.random.split(key)

    # NCHW-shaped probabilities in (0,1) and binary labels, as BCELoss expects.
    shape = (2, 4, 16, 16)
    probs = jax.nn.sigmoid(jax.random.normal(k1, shape, dtype=jnp.float32))
    labels = (jax.random.uniform(k2, shape) > 0.5).astype(jnp.float32)

    out = binary_cross_entropy(probs, labels)
    jax.block_until_ready(out)

    ref = _reference_bce(probs, labels)
    assert jnp.allclose(out, ref, rtol=1e-5, atol=1e-5), (out, ref)

    print("KERNEL_OK")
</pallas_src>

<mosaic_0001>
module attributes {stable_mosaic.version = 11 : i64} {
  func.func @_bce_sum_kernel(%arg0: i32, %arg1: i32, %arg2: memref<16x128xf32, #tpu.memory_space<vmem>>, %arg3: memref<16x128xf32, #tpu.memory_space<vmem>>, %arg4: memref<1x1x1xf32, #tpu.memory_space<vmem>>, %arg5: memref<8x128xf32, #tpu.memory_space<vmem>>) attributes {dimension_semantics = [#tpu.dimension_semantics<parallel>, #tpu.dimension_semantics<arbitrary>], iteration_bounds = array<i64: 1, 1>, scalar_prefetch = 0 : i64, scratch_operands = 1 : i64, tpu.core_type = #tpu.core_type<tc>, window_params = [{transform_indices = @transform_0, window_bounds = array<i64: 16, 128>}, {transform_indices = @transform_1, window_bounds = array<i64: 16, 128>}, {transform_indices = @transform_2, window_bounds = array<i64: 1, 1, 1>}]} {
    %c0_i32 = arith.constant 0 : i32
    %0 = arith.cmpi eq, %arg1, %c0_i32 : i32
    %1 = arith.extui %0 : i1 to i32
    %c0_i32_0 = arith.constant 0 : i32
    %2 = arith.cmpi ne, %1, %c0_i32_0 : i32
    scf.if %2 {
      %cst_14 = arith.constant 0.000000e+00 : f32
      %26 = vector.broadcast %cst_14 : f32 to vector<8x128xf32>
      %c0_15 = arith.constant 0 : index
      %c0_16 = arith.constant 0 : index
      %27 = vector.load %arg5[%c0_15, %c0_16] : memref<8x128xf32, #tpu.memory_space<vmem>>, vector<8x128xf32>
      tpu.vector_store %arg5[%c0_15, %c0_16], %26 {strides = array<i32>} : memref<8x128xf32, #tpu.memory_space<vmem>>, vector<8x128xf32>,
    } else {
    }
    %c0 = arith.constant 0 : index
    %c0_1 = arith.constant 0 : index
    %3 = vector.load %arg2[%c0, %c0_1] : memref<16x128xf32, #tpu.memory_space<vmem>>, vector<16x128xf32>
    %c0_2 = arith.constant 0 : index
    %c0_3 = arith.constant 0 : index
    %4 = vector.load %arg3[%c0_2, %c0_3] : memref<16x128xf32, #tpu.memory_space<vmem>>, vector<16x128xf32>
    %5 = math.log %3 : vector<16x128xf32>
    %cst = arith.constant -1.000000e+02 : f32
    %6 = vector.broadcast %cst : f32 to vector<16x128xf32>
    %7 = arith.maximumf %5, %6 : vector<16x128xf32>
    %cst_4 = arith.constant 1.000000e+00 : f32
    %8 = vector.broadcast %cst_4 : f32 to vector<16x128xf32>
    %9 = arith.subf %8, %3 : vector<16x128xf32>
    %10 = math.log %9 : vector<16x128xf32>
    %cst_5 = arith.constant -1.000000e+02 : f32
    %11 = vector.broadcast %cst_5 : f32 to vector<16x128xf32>
    %12 = arith.maximumf %10, %11 : vector<16x128xf32>
    %13 = arith.subf %7, %12 : vector<16x128xf32>
    %14 = arith.mulf %4, %13 : vector<16x128xf32>
    %15 = arith.addf %12, %14 : vector<16x128xf32>
    %cst_6 = arith.constant 0.000000e+00 : f32
    %16 = vector.broadcast %cst_6 : f32 to vector<16x128xf32>
    %17 = arith.subf %16, %15 : vector<16x128xf32>
    %c0_7 = arith.constant 0 : index
    %c0_8 = arith.constant 0 : index
    %18 = vector.load %arg5[%c0_7, %c0_8] : memref<8x128xf32, #tpu.memory_space<vmem>>, vector<8x128xf32>
    %19 = vector.shape_cast %17 : vector<16x128xf32> to vector<2x8x128xf32>
    %cst_9 = arith.constant dense<0.000000e+00> : vector<8x128xf32>
    %20 = vector.multi_reduction <add>, %19, %cst_9 [0] : vector<2x8x128xf32> to vector<8x128xf32>
    %21 = arith.addf %18, %20 : vector<8x128xf32>
    %c0_10 = arith.constant 0 : index
    %c0_11 = arith.constant 0 : index
    %22 = vector.load %arg5[%c0_10, %c0_11] : memref<8x128xf32, #tpu.memory_space<vmem>>, vector<8x128xf32>
    tpu.vector_store %arg5[%c0_10, %c0_11], %21 {strides = array<i32>} : memref<8x128xf32, #tpu.memory_space<vmem>>, vector<8x128xf32>,
    %c0_i32_12 = arith.constant 0 : i32
    %23 = arith.cmpi eq, %arg1, %c0_i32_12 : i32
    %24 = arith.extui %23 : i1 to i32
    %c0_i32_13 = arith.constant 0 : i32
    %25 = arith.cmpi ne, %24, %c0_i32_13 : i32
    scf.if %25 {
      %c0_14 = arith.constant 0 : index
      %c0_15 = arith.constant 0 : index
      %26 = vector.load %arg5[%c0_14, %c0_15] : memref<8x128xf32, #tpu.memory_space<vmem>>, vector<8x128xf32>
      %27 = vector.shape_cast %26 : vector<8x128xf32> to vector<1x8x128xf32>
      %cst_16 = arith.constant dense<0.000000e+00> : vector<1xf32>
      %28 = vector.multi_reduction <add>, %27, %cst_16 [1, 2] : vector<1x8x128xf32> to vector<1xf32>
      %29 = vector.shape_cast %28 : vector<1xf32> to vector<1x1x1xf32>
      %30 = vector.extract %29[0, 0, 0] : f32 from vector<1x1x1xf32>
      %31 = vector.broadcast %30 : f32 to vector<1x1x1xf32>
      %c0_17 = arith.constant 0 : index
      %c0_18 = arith.constant 0 : index
      %c0_19 = arith.constant 0 : index
      %32 = vector.load %arg4[%c0_17, %c0_18, %c0_19] : memref<1x1x1xf32, #tpu.memory_space<vmem>>, vector<1x1x1xf32>
      tpu.vector_store %arg4[%c0_17, %c0_18, %c0_19], %31 {strides = array<i32>} : memref<1x1x1xf32, #tpu.memory_space<vmem>>, vector<1x1x1xf32>,
    } else {
    }
    return
  }
  func.func @transform_0(%arg0: i32, %arg1: i32) -> (i32, i32) {
    %c1_i32 = arith.constant 1 : i32
    %0 = arith.muli %arg0, %c1_i32 : i32
    %1 = arith.addi %0, %arg1 : i32
    %c0_i32 = arith.constant 0 : i32
    %2 = arith.minsi %1, %c0_i32 : i32
    %c0_i32_0 = arith.constant 0 : i32
    %c0_i32_1 = arith.constant 0 : i32
    return %2, %c0_i32_0 : i32, i32
  }
  func.func @transform_1(%arg0: i32, %arg1: i32) -> (i32, i32) {
    %c1_i32 = arith.constant 1 : i32
    %0 = arith.muli %arg0, %c1_i32 : i32
    %1 = arith.addi %0, %arg1 : i32
    %c0_i32 = arith.constant 0 : i32
    %2 = arith.minsi %1, %c0_i32 : i32
    %c0_i32_0 = arith.constant 0 : i32
    %c0_i32_1 = arith.constant 0 : i32
    return %2, %c0_i32_0 : i32, i32
  }
  func.func @transform_2(%arg0: i32, %arg1: i32) -> (i32, i32, i32) {
    %c0_i32 = arith.constant 0 : i32
    %c0_i32_0 = arith.constant 0 : i32
    %c0_i32_1 = arith.constant 0 : i32
    return %arg0, %c0_i32, %c0_i32_0 : i32, i32, i32
  }
}

</mosaic_0001>

<bundles_post_ra>
// kernel: binary_cross_entropy.1
= control target key start
LH: loop header
LB: loop body
LE: loop exit
PB: predicated region body
PF: predicated region fallthrough
CT: control target
= control target key end

     0   :  { %s228_s0 = inlined_call_operand.vmem [shape: f32[16,128], index: 0, kind: input, shape index: {}]   ;;  %s229_s1 = inlined_call_operand.vmem [shape: f32[16,128], index: 1, kind: input, shape index: {}]   ;;  %s230_s2 = inlined_call_operand.hbm [shape: f32[1,1,1], index: 2, kind: output, shape index: {}]  }
   0x1   :  { %v81_v0 = vld [vmem:[%s228_s0] sm:$0xff]  ;;  %v82_v1 = vld [vmem:[%s228_s0 + $0x8] sm:$0xff] }
   0x2   :  { %156 = vlog2.f32 %v81_v0  ;;  %v91_v2 = vsub.f32 1.0, %v81_v0  ;;  %v92_v3 = vsub.f32 1.0, %v82_v1 }
   0x3   :  { %7 = vsyncpa [#allocation4], 0  ;;  %158 = vlog2.f32 %v82_v1  ;;  %v83_v15 = vld [vmem:[%s229_s1] sm:$0xff]  ;;  %v84_v17 = vld [vmem:[%s229_s1 + $0x8] sm:$0xff]  ;;  %s188_s16 = smov [#allocation3]   ;;  %vm125_vm0 = vcmask 0  }
   0x4   :  { %160 = vlog2.f32 %v91_v2  ;;  %s133_s1 = sshll.u32 %s188_s16, 4  ;;  %s134_s1 = int_to_ptr.vmem [resolvable:$true] %s133_s1 }
   0x5   :  { %162 = vlog2.f32 %v92_v3  ;;  %s164_s18 = scalar_lea.vmem %s134_s1, 16  ;;  %s168_s19 = scalar_lea.vmem %s134_s1, 32 }
   0x6   :  { %p165_p0 = scmp.ne.s32.totalorder %s134_s1, %s164_s18  ;;  %p169_p1 = scmp.lt.s32.totalorder %s134_s1, %s134_s1 }
   0x7   :  { %p170_p2 = scmp.lt.s32.totalorder %s168_s19, %s164_s18 }
   0x9   :  { %p171_p3 = por %p170_p2, %p169_p1 }
   0xb   :  { %p172_p4 = pnand %p171_p3, %p165_p0 }
   0xc   :  { %v157_v4 = vpop.eup %156 }
   0xd   :  { %v159_v5 = vpop.eup %158  ;;  %v86_v6 = vmul.f32 0.6931472, %v157_v4 }
   0xe   :  { %v161_v7 = vpop.eup %160  ;;  %v88_v8 = vmul.f32 0.6931472, %v159_v5 }
   0xf   :  { %v163_v9 = vpop.eup %162  ;;  %v89_v10 = vmax.f32 %v86_v6, -100.0  ;;  %v94_v11 = vmul.f32 0.6931472, %v161_v7 }
  0x10   :  { %v90_v12 = vmax.f32 %v88_v8, -100.0  ;;  %v96_v13 = vmul.f32 0.6931472, %v163_v9 }
  0x11   :  { %v97_v14 = vmax.f32 %v94_v11, -100.0 }
  0x12   :  { %v98_v16 = vmax.f32 %v96_v13, -100.0 }
  0x13   :  { %v99_v18 = vsub.f32 %v89_v10, %v97_v14 }
  0x14   :  { %v100_v19 = vsub.f32 %v90_v12, %v98_v16 }
  0x15   :  { %v101_v20 = vmul.f32 %v99_v18, %v83_v15 }
  0x16   :  { %v102_v21 = vmul.f32 %v100_v19, %v84_v17 }
  0x17   :  { %v103_v22 = vadd.f32 %v101_v20, %v97_v14 }
  0x18   :  { %v104_v23 = vadd.f32 %v102_v21, %v98_v16 }
  0x19   :  { %v105_v24 = vsub.f32 0.0, %v103_v22 }
  0x1a   :  { %v106_v25 = vsub.f32 0.0, %v104_v23 }
  0x1c   :  { %v108_v26 = vadd.f32 %v106_v25, %v105_v24 }
  0x1e   :  { %115 = vadd.xlane.f32.xlu0 %v108_v26 }
  0xab   :  { %v116_v27 = vpop.xlane.xlu0 %115 }
  0xac   :  { %v117_v28 = vrot.slane %v116_v27, 4 }
  0xae   :  { %v118_v29 = vadd.f32 %v117_v28, %v116_v27 }
  0xb0   :  { %v119_v30 = vrot.slane %v118_v29, 2 }
  0xb2   :  { %v120_v31 = vadd.f32 %v119_v30, %v118_v29 }
  0xb4   :  { %v121_v32 = vrot.slane %v120_v31, 1 }
  0xb6   :  { %v122_v33 = vadd.f32 %v121_v32, %v120_v31 }
  0xb8   :  { %153 = vpush %v122_v33 }
  0xe9   :  { %s154_s17 = spop %153 }
  0xea   :  { %v124_v34 = vstv %s154_s17 }
  0xeb   :  { %126 = vst.msk [vmem:[#allocation3] sm:$0x1] %vm125_vm0, %v124_v34 }
  0xec   :  { %175 = shalt.err (!%p172_p4)
}
  0xed   :  { %s176_s22 = scalar_lea.hbm %s230_s2, 16 }
  0xee   :  { %p177_p5 = scmp.ne.s32.totalorder %s230_s2, %s176_s22  ;;  %p180_p6 = scmp.lt.u32.totalorder %s176_s22, %s230_s2 }
  0xf0   :  { %p182_p7 = pnand %p180_p6, %p177_p5 }
  0xf2   :  { %185 = shalt.err (!%p182_p7)
}
  0xf3   :  { %136 = dma.vmem_to_hbm [thread:$0]  %s134_s1, 16, %s230_s2, [#allocation4]  }
  0xf4   :  { %186 = dma.done.wait [#allocation4], 16  }
  0xf5   :  { %187 = vsyncadd [#allocation4], 4294967280 }
  0xf6   :  { %140 = vsyncpa [#allocation4], 1 }

</bundles_post_ra>
